<compile_context>
chip_gen: v5e
topology: v5e:2x2
jax: 0.10.0
libtpu: 0.0.40
codegen_flags: <defaults>
</compile_context>

<pallas_src>
import functools

import jax
import jax.numpy as jnp
from jax import lax
from jax.experimental import pallas as pl
from jax.experimental.pallas import tpu as pltpu


_MASK_VALUE = -1e30   # large-negative finite value for masked kv columns
_LANES = 128          # lane width used for the lane-replicated m / l scratch


def _lane_rep(x, n):
    """Expand a lane-replicated (rows, _LANES) array to (rows, n) columns."""
    cols = x.shape[-1]
    if n == cols:
        return x
    if n < cols:
        return x[:, :n]            # all lanes equal -> a lane slice is exact
    return jnp.broadcast_to(x[:, :1], (x.shape[0], n))


def _make_flash_kernel(scale, block_k, kv_len, dim_v, mask_kv):
    """Kernel factory: scale / kv-mask decisions are static (trace-time)."""

    def kernel(q_ref, k_ref, v_ref, o_ref, m_sc, l_sc, acc_sc):
        # Refs are 2-D [rows, dim]; the batch dim is squeezed via block_shape None.
        ki = pl.program_id(2)

        @pl.when(ki == 0)
        def _init():
            m_sc[...] = jnp.full_like(m_sc, _MASK_VALUE)
            l_sc[...] = jnp.zeros_like(l_sc)
            acc_sc[...] = jnp.zeros_like(acc_sc)

        q = q_ref[...]                        # keep input dtype for the MXU feed
        if scale:                             # static; matches PyTorch `if scale:`
            # Fold scale into Q: one [bq, d] multiply per q tile instead of a
            # [bq, bk] multiply per kv step.
            q = q * jnp.asarray(scale, dtype=q.dtype)
        k = k_ref[...]
        v = v_ref[...]

        # S = Q @ K^T : contract last dims directly (no transpose), f32 acc.
        s = lax.dot_general(q, k, (((1,), (1,)), ((), ())),
                            preferred_element_type=jnp.float32)

        if mask_kv:                           # only emitted when len_k % bk != 0
            col = ki * block_k + lax.broadcasted_iota(jnp.int32, s.shape, 1)
            s = jnp.where(col < kv_len, s, _MASK_VALUE)
            # Zero out-of-bounds V rows so garbage in the partial boundary
            # block can never contaminate the PV accumulation.
            row = ki * block_k + lax.broadcasted_iota(jnp.int32, (block_k, 1), 0)
            v = jnp.where(row < kv_len, v, jnp.zeros((), v.dtype))

        # ---- online softmax update (lane-replicated m / l scratch) ----------
        m_prev = m_sc[...]                                  # (bq, 128)
        m_curr = jnp.max(s, axis=-1, keepdims=True)         # (bq, 1)
        m_new = jnp.maximum(m_prev, m_curr)                 # (bq, 128) replicated
        alpha = jnp.exp(m_prev - m_new)                     # (bq, 128)

        p = jnp.exp(s - _lane_rep(m_new, s.shape[-1]))      # (bq, bk) f32

        l_sc[...] = alpha * l_sc[...] + jnp.sum(p, axis=-1, keepdims=True)
        acc_sc[...] = _lane_rep(alpha, dim_v) * acc_sc[...] + jnp.dot(
            p.astype(v.dtype), v, preferred_element_type=jnp.float32)
        m_sc[...] = m_new

        @pl.when(ki == pl.num_programs(2) - 1)
        def _finalize():
            l = l_sc[...]
            # Exact divide (no approx reciprocal); guard any fully-masked row.
            inv_l = 1.0 / jnp.where(l == 0.0, 1.0, l)
            o_ref[...] = (acc_sc[...] * _lane_rep(inv_l, dim_v)).astype(o_ref.dtype)

    return kernel


@functools.partial(jax.jit, static_argnames=("scale", "block_q", "block_k"))
def scaled_dot_product_attention(Q, K, V, scale=None, block_q=512, block_k=256):
    """Pallas implementation of Scaled_Dot_Product_Attention.forward.

    Q: [B, len_Q, dim_Q], K: [B, len_K, dim_K], V: [B, len_V, dim_V]
    Returns: [B, len_Q, dim_V]

    block_q / block_k (when smaller than the sequence lengths) must be
    multiples of 8.
    """
    B, len_q, dim_q = Q.shape
    Bk, len_k, dim_k = K.shape
    Bv, len_v, dim_v = V.shape
    assert dim_q == dim_k and len_k == len_v and B == Bk == Bv

    # Tile sizes: a block dim may equal the full array dim (even if not
    # 8/128-aligned), otherwise use the 8-aligned tile and let Pallas handle
    # the partial boundary blocks (OOB output rows are never written back).
    bq = len_q if len_q <= block_q else block_q
    bk = len_k if len_k <= block_k else block_k
    n_q = pl.cdiv(len_q, bq)
    n_k = pl.cdiv(len_k, bk)
    mask_kv = (len_k % bk) != 0               # partial kv boundary block exists

    kernel = _make_flash_kernel(scale=scale, block_k=bk, kv_len=len_k,
                                dim_v=dim_v, mask_kv=mask_kv)

    return pl.pallas_call(
        kernel,
        out_shape=jax.ShapeDtypeStruct((B, len_q, dim_v), Q.dtype),
        grid=(B, n_q, n_k),
        in_specs=[
            pl.BlockSpec((None, bq, dim_q), lambda b, qi, ki: (b, qi, 0)),
            pl.BlockSpec((None, bk, dim_k), lambda b, qi, ki: (b, ki, 0)),
            pl.BlockSpec((None, bk, dim_v), lambda b, qi, ki: (b, ki, 0)),
        ],
        out_specs=pl.BlockSpec((None, bq, dim_v), lambda b, qi, ki: (b, qi, 0)),
        scratch_shapes=[
            pltpu.VMEM((bq, _LANES), jnp.float32),   # running max m (lane-replicated)
            pltpu.VMEM((bq, _LANES), jnp.float32),   # running denom l (lane-replicated)
            pltpu.VMEM((bq, dim_v), jnp.float32),    # f32 context accumulator
        ],
        compiler_params=pltpu.CompilerParams(
            dimension_semantics=("parallel", "parallel", "arbitrary"),
            vmem_limit_bytes=32 * 1024 * 1024,
        ),
    )(Q, K, V)


def _reference(Q, K, V, scale=None):
    s = jnp.einsum("bqd,bkd->bqk", Q, K)
    if scale:
        s = s * scale
    p = jax.nn.softmax(s, axis=-1)
    return jnp.einsum("bqk,bkd->bqd", p, V)


if __name__ == "__main__":
    # Tolerance accounts for default MXU precision on f32 inputs (bf16 passes).
    ATOL = RTOL = 2e-2

    # 1) Small shapes consistent with the module: batch=2, seq=8, hidden=32.
    B, L, D = 2, 8, 32
    kq, kk, kv = jax.random.split(jax.random.PRNGKey(0), 3)
    Q = jax.random.normal(kq, (B, L, D), dtype=jnp.float32)
    K = jax.random.normal(kk, (B, L, D), dtype=jnp.float32)
    V = jax.random.normal(kv, (B, L, D), dtype=jnp.float32)
    scale = 1.0 / (D ** 0.5)

    out = jax.block_until_ready(scaled_dot_product_attention(Q, K, V, scale=scale))
    ref = _reference(Q, K, V, scale=scale)
    assert out.shape == (B, L, D)
    assert jnp.allclose(out, ref, atol=ATOL, rtol=RTOL)

    # scale=None path (matches PyTorch default / `if scale:` truthiness).
    out2 = jax.block_until_ready(scaled_dot_product_attention(Q, K, V))
    assert jnp.allclose(out2, _reference(Q, K, V), atol=ATOL, rtol=RTOL)

    # 2) Non-8-aligned sequence length handled as a single full-extent block
    #    (no host padding, no masking needed).
    B2, L2, D2 = 2, 130, 32
    k1, k2, k3 = jax.random.split(jax.random.PRNGKey(1), 3)
    Q2 = jax.random.normal(k1, (B2, L2, D2), dtype=jnp.float32)
    K2 = jax.random.normal(k2, (B2, L2, D2), dtype=jnp.float32)
    V2 = jax.random.normal(k3, (B2, L2, D2), dtype=jnp.float32)
    sc2 = 1.0 / (D2 ** 0.5)
    out3 = jax.block_until_ready(scaled_dot_product_attention(Q2, K2, V2, scale=sc2))
    assert out3.shape == (B2, L2, D2)
    assert jnp.allclose(out3, _reference(Q2, K2, V2, scale=sc2), atol=ATOL, rtol=RTOL)

    # 3) Multi-tile flash pipeline: several q tiles, several kv tiles, partial
    #    boundary blocks on both axes, in-kernel kv masking.
    B3, L3, D3 = 2, 300, 64
    k4, k5, k6 = jax.random.split(jax.random.PRNGKey(2), 3)
    Q3 = jax.random.normal(k4, (B3, L3, D3), dtype=jnp.float32)
    K3 = jax.random.normal(k5, (B3, L3, D3), dtype=jnp.float32)
    V3 = jax.random.normal(k6, (B3, L3, D3), dtype=jnp.float32)
    sc3 = 1.0 / (D3 ** 0.5)
    out4 = jax.block_until_ready(
        scaled_dot_product_attention(Q3, K3, V3, scale=sc3, block_q=128, block_k=256))
    assert out4.shape == (B3, L3, D3)
    assert jnp.allclose(out4, _reference(Q3, K3, V3, scale=sc3), atol=ATOL, rtol=RTOL)

    print("KERNEL_OK")
</pallas_src>

<mosaic_0001>
module attributes {stable_mosaic.version = 11 : i64} {
  func.func @kernel(%arg0: i32, %arg1: i32, %arg2: i32, %arg3: memref<1x8x32xf32, #tpu.memory_space<vmem>>, %arg4: memref<1x8x32xf32, #tpu.memory_space<vmem>>, %arg5: memref<1x8x32xf32, #tpu.memory_space<vmem>>, %arg6: memref<1x8x32xf32, #tpu.memory_space<vmem>>, %arg7: memref<8x128xf32, #tpu.memory_space<vmem>>, %arg8: memref<8x128xf32, #tpu.memory_space<vmem>>, %arg9: memref<8x32xf32, #tpu.memory_space<vmem>>) attributes {dimension_semantics = [#tpu.dimension_semantics<parallel>, #tpu.dimension_semantics<parallel>, #tpu.dimension_semantics<arbitrary>], iteration_bounds = array<i64: 2, 1, 1>, scalar_prefetch = 0 : i64, scratch_operands = 3 : i64, tpu.core_type = #tpu.core_type<tc>, window_params = [{transform_indices = @transform_0, window_bounds = array<i64: 1, 8, 32>}, {transform_indices = @transform_1, window_bounds = array<i64: 1, 8, 32>}, {transform_indices = @transform_2, window_bounds = array<i64: 1, 8, 32>}, {transform_indices = @transform_3, window_bounds = array<i64: 1, 8, 32>}]} {
    %c0_i32 = arith.constant 0 : i32
    %0 = arith.cmpi eq, %arg2, %c0_i32 : i32
    %1 = arith.extui %0 : i1 to i32
    %c0_i32_0 = arith.constant 0 : i32
    %2 = arith.cmpi ne, %1, %c0_i32_0 : i32
    scf.if %2 {
      %cst_27 = arith.constant -1.000000e+30 : f32
      %39 = vector.broadcast %cst_27 : f32 to vector<8x128xf32>
      %c0_28 = arith.constant 0 : index
      %c0_29 = arith.constant 0 : index
      %40 = vector.load %arg7[%c0_28, %c0_29] : memref<8x128xf32, #tpu.memory_space<vmem>>, vector<8x128xf32>
      tpu.vector_store %arg7[%c0_28, %c0_29], %39 {strides = array<i32>} : memref<8x128xf32, #tpu.memory_space<vmem>>, vector<8x128xf32>,
      %cst_30 = arith.constant 0.000000e+00 : f32
      %41 = vector.broadcast %cst_30 : f32 to vector<8x128xf32>
      %c0_31 = arith.constant 0 : index
      %c0_32 = arith.constant 0 : index
      %42 = vector.load %arg8[%c0_31, %c0_32] : memref<8x128xf32, #tpu.memory_space<vmem>>, vector<8x128xf32>
      tpu.vector_store %arg8[%c0_31, %c0_32], %41 {strides = array<i32>} : memref<8x128xf32, #tpu.memory_space<vmem>>, vector<8x128xf32>,
      %cst_33 = arith.constant 0.000000e+00 : f32
      %43 = vector.broadcast %cst_33 : f32 to vector<8x32xf32>
      %c0_34 = arith.constant 0 : index
      %c0_35 = arith.constant 0 : index
      %44 = vector.load %arg9[%c0_34, %c0_35] : memref<8x32xf32, #tpu.memory_space<vmem>>, vector<8x32xf32>
      tpu.vector_store %arg9[%c0_34, %c0_35], %43 {strides = array<i32>} : memref<8x32xf32, #tpu.memory_space<vmem>>, vector<8x32xf32>,
    } else {
    }
    %c0 = arith.constant 0 : index
    %c0_1 = arith.constant 0 : index
    %c0_2 = arith.constant 0 : index
    %3 = vector.load %arg3[%c0, %c0_1, %c0_2] : memref<1x8x32xf32, #tpu.memory_space<vmem>>, vector<1x8x32xf32>
    %4 = vector.shape_cast %3 : vector<1x8x32xf32> to vector<8x32xf32>
    %cst = arith.constant 0.176776692 : f32
    %5 = vector.broadcast %cst : f32 to vector<8x32xf32>
    %6 = arith.mulf %4, %5 : vector<8x32xf32>
    %c0_3 = arith.constant 0 : index
    %c0_4 = arith.constant 0 : index
    %c0_5 = arith.constant 0 : index
    %7 = vector.load %arg4[%c0_3, %c0_4, %c0_5] : memref<1x8x32xf32, #tpu.memory_space<vmem>>, vector<1x8x32xf32>
    %8 = vector.shape_cast %7 : vector<1x8x32xf32> to vector<8x32xf32>
    %c0_6 = arith.constant 0 : index
    %c0_7 = arith.constant 0 : index
    %c0_8 = arith.constant 0 : index
    %9 = vector.load %arg5[%c0_6, %c0_7, %c0_8] : memref<1x8x32xf32, #tpu.memory_space<vmem>>, vector<1x8x32xf32>
    %10 = vector.shape_cast %9 : vector<1x8x32xf32> to vector<8x32xf32>
    %cst_9 = arith.constant dense<0.000000e+00> : vector<8x8xf32>
    %11 = tpu.matmul %6, %8, %cst_9 {dimension_numbers = #tpu.dot_dimension_numbers<[1], [1], [0], [0], [0, 0, 1, 0], [], []>} : vector<8x32xf32>, vector<8x32xf32>, vector<8x8xf32> -> vector<8x8xf32>
    %c0_10 = arith.constant 0 : index
    %c0_11 = arith.constant 0 : index
    %12 = vector.load %arg7[%c0_10, %c0_11] : memref<8x128xf32, #tpu.memory_space<vmem>>, vector<8x128xf32>
    %cst_12 = arith.constant dense<0xFF800000> : vector<8xf32>
    %13 = vector.multi_reduction <maximumf>, %11, %cst_12 [1] : vector<8x8xf32> to vector<8xf32>
    %14 = vector.shape_cast %13 : vector<8xf32> to vector<8x1xf32>
    %15 = vector.broadcast %14 : vector<8x1xf32> to vector<8x128xf32>
    %16 = arith.maximumf %12, %15 : vector<8x128xf32>
    %17 = arith.subf %12, %16 : vector<8x128xf32>
    %18 = math.exp %17 : vector<8x128xf32>
    %19 = vector.extract_strided_slice %16 {offsets = [0, 0], sizes = [8, 8], strides = [1, 1]} : vector<8x128xf32> to vector<8x8xf32>
    %20 = arith.subf %11, %19 : vector<8x8xf32>
    %21 = math.exp %20 : vector<8x8xf32>
    %c0_13 = arith.constant 0 : index
    %c0_14 = arith.constant 0 : index
    %22 = vector.load %arg8[%c0_13, %c0_14] : memref<8x128xf32, #tpu.memory_space<vmem>>, vector<8x128xf32>
    %23 = arith.mulf %18, %22 : vector<8x128xf32>
    %cst_15 = arith.constant dense<0.000000e+00> : vector<8xf32>
    %24 = vector.multi_reduction <add>, %21, %cst_15 [1] : vector<8x8xf32> to vector<8xf32>
    %25 = vector.shape_cast %24 : vector<8xf32> to vector<8x1xf32>
    %26 = vector.broadcast %25 : vector<8x1xf32> to vector<8x128xf32>
    %27 = arith.addf %23, %26 : vector<8x128xf32>
    %c0_16 = arith.constant 0 : index
    %c0_17 = arith.constant 0 : index
    %28 = vector.load %arg8[%c0_16, %c0_17] : memref<8x128xf32, #tpu.memory_space<vmem>>, vector<8x128xf32>
    tpu.vector_store %arg8[%c0_16, %c0_17], %27 {strides = array<i32>} : memref<8x128xf32, #tpu.memory_space<vmem>>, vector<8x128xf32>,
    %29 = vector.extract_strided_slice %18 {offsets = [0, 0], sizes = [8, 32], strides = [1, 1]} : vector<8x128xf32> to vector<8x32xf32>
    %c0_18 = arith.constant 0 : index
    %c0_19 = arith.constant 0 : index
    %30 = vector.load %arg9[%c0_18, %c0_19] : memref<8x32xf32, #tpu.memory_space<vmem>>, vector<8x32xf32>
    %31 = arith.mulf %29, %30 : vector<8x32xf32>
    %cst_20 = arith.constant dense<0.000000e+00> : vector<8x32xf32>
    %32 = tpu.matmul %21, %10, %cst_20 {dimension_numbers = #tpu.dot_dimension_numbers<[1], [0], [0], [1], [0, 0, 1, 1], [], []>} : vector<8x8xf32>, vector<8x32xf32>, vector<8x32xf32> -> vector<8x32xf32>
    %33 = arith.addf %31, %32 : vector<8x32xf32>
    %c0_21 = arith.constant 0 : index
    %c0_22 = arith.constant 0 : index
    %34 = vector.load %arg9[%c0_21, %c0_22] : memref<8x32xf32, #tpu.memory_space<vmem>>, vector<8x32xf32>
    tpu.vector_store %arg9[%c0_21, %c0_22], %33 {strides = array<i32>} : memref<8x32xf32, #tpu.memory_space<vmem>>, vector<8x32xf32>,
    %c0_23 = arith.constant 0 : index
    %c0_24 = arith.constant 0 : index
    %35 = vector.load %arg7[%c0_23, %c0_24] : memref<8x128xf32, #tpu.memory_space<vmem>>, vector<8x128xf32>
    tpu.vector_store %arg7[%c0_23, %c0_24], %16 {strides = array<i32>} : memref<8x128xf32, #tpu.memory_space<vmem>>, vector<8x128xf32>,
    %c0_i32_25 = arith.constant 0 : i32
    %36 = arith.cmpi eq, %arg2, %c0_i32_25 : i32
    %37 = arith.extui %36 : i1 to i32
    %c0_i32_26 = arith.constant 0 : i32
    %38 = arith.cmpi ne, %37, %c0_i32_26 : i32
    scf.if %38 {
      %c0_27 = arith.constant 0 : index
      %c0_28 = arith.constant 0 : index
      %39 = vector.load %arg8[%c0_27, %c0_28] : memref<8x128xf32, #tpu.memory_space<vmem>>, vector<8x128xf32>
      %cst_29 = arith.constant 0.000000e+00 : f32
      %40 = vector.broadcast %cst_29 : f32 to vector<8x128xf32>
      %41 = arith.cmpf oeq, %39, %40 : vector<8x128xf32>
      %cst_30 = arith.constant 1.000000e+00 : f32
      %42 = vector.broadcast %cst_30 : f32 to vector<8x128xf32>
      %43 = arith.select %41, %42, %39 : vector<8x128xi1>, vector<8x128xf32>
      %cst_31 = arith.constant 1.000000e+00 : f32
      %44 = vector.broadcast %cst_31 : f32 to vector<8x128xf32>
      %45 = arith.divf %44, %43 : vector<8x128xf32>
      %c0_32 = arith.constant 0 : index
      %c0_33 = arith.constant 0 : index
      %46 = vector.load %arg9[%c0_32, %c0_33] : memref<8x32xf32, #tpu.memory_space<vmem>>, vector<8x32xf32>
      %47 = vector.extract_strided_slice %45 {offsets = [0, 0], sizes = [8, 32], strides = [1, 1]} : vector<8x128xf32> to vector<8x32xf32>
      %48 = arith.mulf %46, %47 : vector<8x32xf32>
      %c0_34 = arith.constant 0 : index
      %c0_35 = arith.constant 0 : index
      %c0_36 = arith.constant 0 : index
      %49 = vector.load %arg6[%c0_34, %c0_35, %c0_36] : memref<1x8x32xf32, #tpu.memory_space<vmem>>, vector<1x8x32xf32>
      %50 = vector.shape_cast %49 : vector<1x8x32xf32> to vector<8x32xf32>
      %51 = vector.shape_cast %48 : vector<8x32xf32> to vector<1x8x32xf32>
      tpu.vector_store %arg6[%c0_34, %c0_35, %c0_36], %51 {strides = array<i32>} : memref<1x8x32xf32, #tpu.memory_space<vmem>>, vector<1x8x32xf32>,
    } else {
    }
    return
  }
  func.func @transform_0(%arg0: i32, %arg1: i32, %arg2: i32) -> (i32, i32, i32) {
    %c0_i32 = arith.constant 0 : i32
    %c0_i32_0 = arith.constant 0 : i32
    return %arg0, %arg1, %c0_i32 : i32, i32, i32
  }
  func.func @transform_1(%arg0: i32, %arg1: i32, %arg2: i32) -> (i32, i32, i32) {
    %c0_i32 = arith.constant 0 : i32
    %c0_i32_0 = arith.constant 0 : i32
    return %arg0, %arg2, %c0_i32 : i32, i32, i32
  }
  func.func @transform_2(%arg0: i32, %arg1: i32, %arg2: i32) -> (i32, i32, i32) {
    %c0_i32 = arith.constant 0 : i32
    %c0_i32_0 = arith.constant 0 : i32
    return %arg0, %arg2, %c0_i32 : i32, i32, i32
  }
  func.func @transform_3(%arg0: i32, %arg1: i32, %arg2: i32) -> (i32, i32, i32) {
    %c0_i32 = arith.constant 0 : i32
    %c0_i32_0 = arith.constant 0 : i32
    return %arg0, %arg1, %c0_i32 : i32, i32, i32
  }
}

</mosaic_0001>

<bundles_post_ra>
// kernel: scaled_dot_product_attention.1
= control target key start
LH: loop header
LB: loop body
LE: loop exit
PB: predicated region body
PF: predicated region fallthrough
CT: control target
= control target key end

     0   :  { %s1011_s0 = inlined_call_operand.hbm [shape: f32[2,8,32], index: 0, kind: input, shape index: {}]   ;;  %s1012_s1 = inlined_call_operand.hbm [shape: f32[2,8,32], index: 1, kind: input, shape index: {}]   ;;  %s1013_s2 = inlined_call_operand.hbm [shape: f32[2,8,32], index: 2, kind: input, shape index: {}]   ;;  %s1014_s3 = inlined_call_operand.hbm [shape: f32[2,8,32], index: 3, kind: output, shape index: {}]  }
   0x1   :  { %1017 = sst [smem:[#allocation18_spill]] %s1012_s1 }
   0x2   :  { %8 = vsyncpa [#allocation6], 0 }
   0x3   :  { %10 = vsyncpa [#allocation6 + $0x1], 0 }
   0x4   :  { %11 = vsyncpa [#allocation9], 0 }
   0x5   :  { %13 = vsyncpa [#allocation9 + $0x1], 0 }
   0x6   :  { %14 = vsyncpa [#allocation7], 0 }
   0x7   :  { %16 = vsyncpa [#allocation7 + $0x1], 0  ;;  %s848_s12 = smov 0   ;;  %s850_s13 = smov 0  }
   0x8   :  { %s852_s14 = smov 0   ;;  %s854_s15 = smov 0  }
   0x9   :  { %s856_s16 = smov 0   ;;  %s858_s17 = smov 0  }
   0xa LB: > { %1018 = sst [smem:[#allocation15_spill]] %s821_s16  ;;  %s879_s18 = sadd.s32 4294967295, %s825_s17   ;;  %s825_s17 = sphi %s858_s17, %s22_s17   ;;  %s821_s16 = sphi %s856_s16, %s1030_s16   ;;  %s817_s15 = sphi %s854_s15, %s1029_s15   ;;  %s813_s14 = sphi %s852_s14, %s1033_s14   ;;  %s809_s13 = sphi %s850_s13, %s1032_s13   ;;  %s805_s12 = sphi %s848_s12, %s1031_s12  }
   0xb   : > { %s549_s19 = sadd.s32 4294967294, %s825_s17   ;;  %s41_s20 = sadd.s32 1, %s821_s16 }
   0xc   : > { %s50_s21 = sadd.s32 1, %s813_s14  ;;  %p43_p0 = scmp.ge.s32.totalorder %s41_s20, 2 }
   0xd   : > { %p57_p1 = scmp.ne.s32.totalorder %s813_s14, %s809_s13  ;;  %p58_p2 = scmp.eq.s32.totalorder %s825_s17, 0 }
   0xe   : > { %p63_p3 = scmp.ne.s32.totalorder %s809_s13, %s805_s12  ;;  %s1035_s20 = smov (%p43_p0, %s41_s20), 0 }
   0xf   : > { %1019 = sst [smem:[#allocation16_spill]] %s1035_s20  ;;  %p891_p4 = por %p58_p2, %p57_p1 }
  0x10   : > { %p64_p5 = scmp.eq.s32.totalorder %s879_s18, 0  ;;  %s45_s23 = ssub.s32 %s821_s16, %s1035_s20 }
  0x11   : > { %p145_p6 = scmp.eq.s32.totalorder %s879_s18, 1  ;;  %p48_p7 = scmp.eq.s32.totalorder %s45_s23, 0 }
  0x12   : > { %p899_p8 = por %p64_p5, %p63_p3  ;;  %p151_p10 = scmp.eq.s32.totalorder %s549_s19, 1 }
  0x13   : > { %p903_p9 = por %p145_p6, %p57_p1  ;;  %p551_p12 = scmp.ge.s32.totalorder %s825_s17, 2 }
  0x14   : > { %s908_s26 = scalar_select %p48_p7, %s813_s14, %s50_s21  }
  0x15   : > { %p910_p11 = por %p151_p10, %p63_p3  ;;  %p592_p13 = scmp.lt.s32.totalorder %s825_s17, 2 }
  0x16   : > { %1023 = sst [smem:[#allocation17_spill]] %s908_s26  ;;  %s171_s28 = sand.u32 1, %s813_s14  }
  0x17   : > { %s552_s29 = sshll.u32 %s171_s28, 3  ;;  %s553_s30 = sshll.u32 %s821_s16, 3 }
  0x18   : > { %p920_p0 = pnand %p592_p13, %p891_p4  ;;  %s191_s5 = sand.u32 1, %s825_s17  }
  0x19   : > { %s1026_s1 = sld [smem:[#allocation18_spill]]  ;;  %s195_s10 = scalar_lea.vmem [#allocation8], %s552_s29 }
  0x1a   : > { %s204_s11 = sshll.u32 %s195_s10, 4  ;;  %s192_s19 = scalar_lea.sflag [#allocation9], %s191_s5  ;;  %s205_s11 = int_to_ptr.vmem [resolvable:$true] %s204_s11 }
  0x1b   : > { %p558_p1 = scmp.ge.s32.totalorder %s825_s17, 1  ;;  %p229_p2 = scmp.lt.s32.totalorder %s825_s17, 3 }
  0x1c   : > { %s180_s6 = scalar_lea.hbm %s1011_s0, %s553_s30  ;;  %s172_s10 = scalar_lea.sflag [#allocation6], %s171_s28 }
  0x1d   : > { %p932_p3 = pnand %p558_p1, %p229_p2  ;;  %s182_s7 = sshll.u32 %s180_s6, 4  ;;  %s183_s7 = int_to_ptr.hbm [resolvable:$true] %s182_s7 }
  0x1e   : > { %s215_s16 = scalar_lea.vmem [#allocation10], %s552_s29  ;;  %s949_s22 = sand.u32 (!%p932_p3), 1, %s809_s13  }
  0x1f   : > { %s200_s8 = scalar_lea.hbm %s1026_s1, %s553_s30  ;;  %s224_s26 = sshll.u32 %s215_s16, 4  ;;  %s225_s26 = int_to_ptr.vmem [resolvable:$true] %s224_s26 }
  0x20   : > { %s202_s9 = sshll.u32 %s200_s8, 4  ;;  %s175_s8 = scalar_lea.vmem [#allocation5], %s552_s29  ;;  %s203_s9 = int_to_ptr.hbm [resolvable:$true] %s202_s9 }
  0x21   : > { %584 = dma.hbm_to_vmem [thread:$0]  (!%p920_p0), %s203_s9, 128, %s205_s11, %s192_s19  }
  0x22   : > { %s184_s1 = sshll.u32 %s175_s8, 4  ;;  %s220_s11 = scalar_lea.hbm %s1013_s2, %s553_s30  ;;  %s185_s1 = int_to_ptr.vmem [resolvable:$true] %s184_s1 }
  0x23   : > { %581 = dma.hbm_to_vmem [thread:$0]  (!%p920_p0), %s183_s7, 128, %s185_s1, %s172_s10  }
  0x24   : > { %s222_s20 = sshll.u32 %s220_s11, 4  ;;  %233 = sbr.rel (%p932_p3) target bundleno = 448 (0x1c0), region = 32  ;;  %s223_s20 = int_to_ptr.hbm [resolvable:$true] %s222_s20 }
  0x25   : > { %587 = dma.hbm_to_vmem [thread:$0]  (!%p920_p0), %s223_s20, 128, %s225_s26, %s192_s19  }
  0x26   : > { %s952_s1 = sshll.u32 (!%p932_p3), %s949_s22, 3  ;;  %s236_s28 = scalar_lea.sflag (!%p932_p3), [#allocation6], %s949_s22 }
  0x27   : > { %s239_s30 = scalar_lea.vmem (!%p932_p3), [#allocation5], %s952_s1 }
  0x29   : > { %792 = dma.done.wait (%p899_p8), %s236_s28, 128  }
  0x2a   : > { %794 = vsyncadd (%p899_p8), %s236_s28, 4294967168  ;;  %s245_s16 = sand.u32 1, %s879_s18   ;;  %s249_s26 = scalar_lea.vmem [#allocation8], %s952_s1 }
  0x2b   : > { %s246_s20 = scalar_lea.sflag [#allocation9], %s245_s16 }
  0x2c   : > { %796 = dma.done.wait (%p899_p8), %s246_s20, 256  }
  0x2d   : > { %798 = vsyncadd (%p899_p8), %s246_s20, 4294967040  ;;  %vm299_vm0 = vcmask 261120   ;;  %v827_v0 = vmov 0.0   ;;  %v303_v1 = vld [vmem:[%s249_s26] sm:$0xff]  ;;  %v301_v2 = vld [vmem:[%s239_s30] sm:$0xff]  ;;  %vm333_vm1 = vcmask 64512  }
  0x2e   : > { %300 = vst.msk [vmem:[#allocation4] sm:$0xff] %vm299_vm0, %v827_v0  ;;  %563 = vmatpush.xpose.msk.msra.mxu0 %vm299_vm0, %v303_v1  ;;  %v302_v3 = vmul.f32 0.17677669, %v301_v2  ;;  %s259_s18 = scalar_lea.vmem [#allocation10], %s952_s1  ;;  %s567_s24 = sshll.u32 %s817_s15, 3 }
  0x2f   : > { %v304_v6 = vld [vmem:[%s259_s18] sm:$0xff]  ;;  %s415_s19 = scalar_lea.hbm %s1014_s3, %s567_s24  ;;  %s292_s21 = scalar_lea.vmem [#allocation11], %s952_s1 }
  0x30   : > { %371 = vmatpush.msra.mxu1 %v304_v6  ;;  %s417_s23 = sshll.u32 %s292_s21, 4  ;;  %s419_s6 = sshll.u32 %s415_s19, 4  ;;  %s418_s23 = int_to_ptr.vmem [resolvable:$true] %s417_s23  ;;  %s420_s6 = int_to_ptr.hbm [resolvable:$true] %s419_s6 }
  0x31   : > { %564 = vmatmul.msk.f32.vlgmr.msra.gmra.mxu0 %vm299_vm0, %v302_v3  ;;  %s404_s15 = scalar_lea.sflag [#allocation7], %s949_s22  ;;  %s753_s7 = sshra.s32 %s420_s6, 4  ;;  %s754_s7 = int_to_ptr.hbm [resolvable:$true] %s753_s7 }
  0x32   : > { %s755_s8 = scalar_lea.hbm %s754_s7, 8  ;;  %s759_s9 = scalar_lea.hbm %s1014_s3, 16 }
  0x33   : > { %p756_p4 = scmp.ne.s32.totalorder %s754_s7, %s755_s8  ;;  %p760_p7 = scmp.lt.s32.totalorder %s754_s7, %s1014_s3 }
  0x34   : > { %p761_p8 = scmp.lt.s32.totalorder %s759_s9, %s755_s8 }
  0x35   : > { %v351_v20 = vld [vmem:[#allocation4] sm:$0xff]  ;;  %p757_p5 = pnand %p756_p4, %p903_p9 }
  0x36   : > { %p762_p10 = por %p761_p8, %p760_p7 }
  0x37   : > { %p758_p6 = pneg %p757_p5 }
  0x39   : > { %p763_p13 = pnand %p762_p10, %p758_p6 }
  0xae   : > { %v329_v4 = vpop.f32.mrf.mxu0 }
  0xaf   : > { %v334_v5 = vsel %vm333_vm1, %v329_v4, -inf }
  0xb0   : > { %335 = vmax.xlane.f32.xlu0 %v334_v5 }
 0x123   : > { %v336_v7 = vpop.xlane.xlu0 %335 }
 0x124   : > { %v337_v8 = vmax.f32 %v336_v7, -1e+30 }
 0x126   : > { %v341_v9 = vsub.f32 %v329_v4, %v337_v8  ;;  %v338_v13 = vsub.f32 -1e+30, %v337_v8 }
 0x128   : > { %v342_v10 = vmul.f32 1.442695, %v341_v9  ;;  %v339_v14 = vmul.f32 1.442695, %v338_v13 }
 0x12a   : > { %643 = vpow2.f32 %v342_v10 }
 0x12b   : > { %645 = vpow2.f32 %v339_v14 }
 0x130   : > { %v644_v11 = vpop.eup %643 }
 0x131   : > { %565 = vmatmul.msk.f32.vlgmr.msra.gmra.mxu1 %vm333_vm1, %v644_v11  ;;  %v346_v12 = vsel %vm333_vm1, %v644_v11, 0.0  ;;  %v646_v15 = vpop.eup %645 }
 0x132   : > { %347 = vadd.xlane.f32.xlu0 %v346_v12  ;;  %v345_v16 = vmul.f32 0.0, %v646_v15  ;;  %v352_v21 = vmul.f32 %v646_v15, %v351_v20 }
 0x1a5   : > { %v348_v17 = vpop.xlane.xlu0 %347 }
 0x1a6   : > { %v349_v18 = vadd.f32 %v348_v17, %v345_v16 }
 0x1a8   : > { %vm383_vm2 = vcmp.eq.f32.partialorder %v349_v18, 0.0 }
 0x1a9   : > { %v384_v19 = vsel %vm383_vm2, 1.0, %v349_v18 }
 0x1aa   : > { %647 = vrcp.f32 %v384_v19  ;;  %v396_v27 = vand.u32 2147483648, %v384_v19  ;;  %v394_v29 = vand.u32 2147483647, %v384_v19  ;;  %vm390_vm4 = vweird.f32 %v384_v19 }
 0x1ac   : > { %v397_v31 = vor.u32 1.1754944e-38, %v396_v27  ;;  %vm395_vm6 = vcmp.eq.f32.partialorder %v394_v29, 8.507059e+37 }
 0x1ae   : > { %v373_v22 = vpop.f32.mrf.mxu1 }
 0x1af   : > { %v376_v23 = vadd.f32 %v373_v22, %v352_v21 }
 0x1b0   : > { %v648_v24 = vpop.eup %647 }
 0x1b1   : > { %v386_v25 = vmul.f32 %v648_v24, %v384_v19  ;;  %377 = vst.msk [vmem:[#allocation4] sm:$0xff] %vm299_vm0, %v376_v23  ;;  %vm391_vm3 = vweird.f32 %v648_v24 }
 0x1b2   : > { %vm392_vm5 = vmor %vm390_vm4, %vm391_vm3 }
 0x1b3   : > { %v387_v26 = vsub.f32 1.0, %v386_v25 }
 0x1b5   : > { %v388_v28 = vmul.f32 %v648_v24, %v387_v26 }
 0x1b7   : > { %v389_v30 = vadd.f32 %v648_v24, %v388_v28 }
 0x1b8   : > { %v400_v34 = vld [vmem:[#allocation4] sm:$0xff] }
 0x1b9   : > { %v393_v32 = vsel %vm392_vm5, %v648_v24, %v389_v30 }
 0x1ba   : > { %v398_v33 = vsel %vm395_vm6, %v397_v31, %v393_v32 }
 0x1bb   : > { %v401_v35 = vmul.f32 %v400_v34, %v398_v33 }
 0x1bd   : > { %402 = vst.msk [vmem:[%s292_s21] sm:$0xff] %vm299_vm0, %v401_v35 }
 0x1be   : > { %766 = shalt.err (!%p763_p13)
}
 0x1bf   : > { %576 = dma.vmem_to_hbm [thread:$0]  (%p903_p9), %s418_s23, 128, %s420_s6, %s404_s15  }
 0x1c0 PF: > { %s431_s22 = sand.u32 1, %s805_s12   ;;  %p589_p0 = pnand %p551_p12, %p910_p11 }
 0x1c1   : > { %s432_s28 = scalar_lea.sflag [#allocation7], %s431_s22 }
 0x1c2   : > { %p590_p1 = pneg %p589_p0 }
 0x1c4   : > { %800 = dma.done.wait (%p590_p1), %s432_s28, 128  }
 0x1c5   : > { %802 = vsyncadd (%p590_p1), %s432_s28, 4294967168  ;;  %s22_s17 = sadd.s32 1, %s825_s17   ;;  %s1028_s30 = sld [smem:[#allocation17_spill]] }
 0x1c6   : > { %p19_p2 = scmp.ge.s32.totalorder %s22_s17, 4   ;;  %s1029_s15 = sld [smem:[#allocation15_spill]] }
 0x1c7   : > { %s1030_s16 = sld [smem:[#allocation16_spill]]  ;;  %s1031_s12 = smov %s809_s13 }
 0x1c8   : > { %s1032_s13 = smov %s813_s14  ;;  %21 = sbr.rel (!%p19_p2) target bundleno = 10 (0xa), region = 109 }
 0x1cb   : > { %s1033_s14 = smov %s1028_s30 }
 0x1cd   :  { %438 = vsyncpa [#allocation6], 1 }
 0x1ce   :  { %440 = vsyncpa [#allocation6 + $0x1], 1 }
 0x1cf   :  { %441 = vsyncpa [#allocation9], 1 }
 0x1d0   :  { %443 = vsyncpa [#allocation9 + $0x1], 1 }
 0x1d1   :  { %444 = vsyncpa [#allocation7], 1 }
 0x1d2   :  { %446 = vsyncpa [#allocation7 + $0x1], 1 }

</bundles_post_ra>
